<compile_context>
chip_gen: v6e
topology: v6e:2x2x1
jax: 0.10.0
libtpu: 0.0.40
codegen_flags: <defaults>
</compile_context>

<pallas_src>
import math
import functools

import jax
import jax.numpy as jnp
from jax.experimental import pallas as pl
from jax.experimental.pallas import tpu as pltpu

INPUT_DIM = 29  # self.input_dimension = 29 in the PyTorch module


def _activation(name, x):
    if name == "relu":
        return jnp.maximum(x, 0.0)
    if name == "sigmoid":
        return jax.nn.sigmoid(x)
    if name == "tanh":
        return jnp.tanh(x)
    if name == "leaky_relu":
        return jnp.where(x >= 0, x, 0.01 * x)  # PyTorch LeakyReLU default slope
    raise ValueError(f"unknown activation {name}")


def _mlp_kernel(*refs, num_layers, activation):
    # refs = (x_ref, w0, b0, w1, b1, ..., w_{m-1}, b_{m-1}, o_ref)
    # Transposed orientation: x_ref is (in_features, tb) with batch on the lane
    # axis, w_i is (out_i, in_i), b_i is (out_i, 1). Each layer is
    #   h = W @ h + b          (bias broadcast over lanes)
    # so all activation tiles and the final (1, tb) output store are lane-dense.
    x_ref = refs[0]
    o_ref = refs[-1]
    wb = refs[1:-1]

    h = x_ref[...].astype(jnp.float32)
    for li in range(num_layers):
        w = wb[2 * li][...]
        b = wb[2 * li + 1][...]
        h = jnp.dot(w, h, preferred_element_type=jnp.float32) + b
        # Params arrive pre-fused (input Linear composed into layer0), so the
        # rule reduces to: activation after every layer except the last one.
        if li < num_layers - 1:
            h = _activation(activation, h)
    o_ref[...] = h.astype(o_ref.dtype)


def init_params(layers, key):
    """Deterministic PyTorch-Linear-style init: U(-1/sqrt(fan_in), 1/sqrt(fan_in)).
    Stored as (in_features, out_features) / (1, out_features) so the reference
    math is simply  h = h @ W + b."""
    dims = [INPUT_DIM] + list(layers) + [1]
    params = []
    for i in range(len(dims) - 1):
        fan_in, fan_out = dims[i], dims[i + 1]
        key, kw, kb = jax.random.split(key, 3)
        bound = 1.0 / math.sqrt(fan_in)
        w = jax.random.uniform(kw, (fan_in, fan_out), jnp.float32, -bound, bound)
        b = jax.random.uniform(kb, (1, fan_out), jnp.float32, -bound, bound)
        params.append((w, b))
    return params


def _round_up(n, m):
    return ((n + m - 1) // m) * m


def _prepare_params(params):
    """Fuse the 'input' Linear into the first 'layer{0}' Linear (valid: no
    activation between them in the module) and transpose every (w, b) to the
    batch-on-lane orientation: W -> (out, in), b -> (out, 1)."""
    params = list(params)
    if len(params) >= 2:
        (w0, b0), (w1, b1) = params[0], params[1]
        w01 = w0 @ w1          # (29, L1)
        b01 = b0 @ w1 + b1     # (1, L1)
        params = [(w01, b01)] + params[2:]
    return [(w.T, b.T) for (w, b) in params]


def neural_net_regressor_forward(x, params, activation="relu", tb=512):
    """x: (B, 29) float32 -> (B, 1) float32. One fused Pallas kernel, tiled over
    the batch dimension (batch on the lane axis inside the kernel)."""
    B, D = x.shape
    assert D == INPUT_DIM

    fused = _prepare_params(params)
    num_layers = len(fused)

    # Batch tile: multiple of 128 lanes; capped so tiny batches are not blown up.
    tb = max(128, _round_up(int(tb), 128))
    tb = min(tb, _round_up(B, 128))
    b_pad = _round_up(B, tb)
    grid = b_pad // tb

    # Pad batch (zeros) and transpose so batch sits on the lane axis: (29, B_pad).
    if b_pad != B:
        x = jnp.pad(x, ((0, b_pad - B), (0, 0)))
    xt = x.T

    kernel = functools.partial(
        _mlp_kernel, num_layers=num_layers, activation=activation
    )

    in_specs = [pl.BlockSpec((D, tb), lambda i: (0, i))]
    flat_wb = []
    for (w, b) in fused:
        in_specs.append(pl.BlockSpec(w.shape, lambda i: (0, 0)))
        in_specs.append(pl.BlockSpec(b.shape, lambda i: (0, 0)))
        flat_wb.extend([w, b])

    out = pl.pallas_call(
        kernel,
        out_shape=jax.ShapeDtypeStruct((1, b_pad), jnp.float32),
        grid_spec=pltpu.PrefetchScalarGridSpec(
            num_scalar_prefetch=0,
            grid=(grid,),
            in_specs=in_specs,
            out_specs=pl.BlockSpec((1, tb), lambda i: (0, i)),
        ),
        compiler_params=pltpu.CompilerParams(
            dimension_semantics=("parallel",),
        ),
    )(xt, *flat_wb)

    return out[0, :B].reshape(B, 1)


def _reference_forward(x, params, activation="relu"):
    # Pure-JAX reference on the ORIGINAL (un-fused, un-transposed) params.
    h = x
    n = len(params)
    for li, (w, b) in enumerate(params):
        h = h @ w + b
        if 0 < li < n - 1:
            h = _activation(activation, h)
    return h


if __name__ == "__main__":
    key = jax.random.PRNGKey(0)
    k_x, k_p = jax.random.split(key)

    # Small, forward-consistent shapes: batch=16, layers=[32, 32], activation='relu'
    layers = [32, 32]
    activation = "relu"
    B = 16

    x = jax.random.normal(k_x, (B, INPUT_DIM), jnp.float32)
    params = init_params(layers, k_p)

    out = neural_net_regressor_forward(x, params, activation=activation, tb=512)
    out = jax.block_until_ready(out)

    ref = _reference_forward(x, params, activation=activation)
    assert out.shape == (B, 1), out.shape
    assert jnp.allclose(out, ref, atol=1e-4, rtol=1e-4), "mismatch vs. reference"

    # TODO(synk): training path (fit/Adam/ExponentialLR/MSELoss) is not translated;
    # only the forward pass is implemented as a kernel.
    print("KERNEL_OK")
</pallas_src>

<mosaic_0001>
module attributes {stable_mosaic.version = 11 : i64} {
  func.func @_mlp_kernel(%arg0: i32, %arg1: memref<29x128xf32, #tpu.memory_space<vmem>>, %arg2: memref<32x29xf32, #tpu.memory_space<vmem>>, %arg3: memref<32x1xf32, #tpu.memory_space<vmem>>, %arg4: memref<1x32xf32, #tpu.memory_space<vmem>>, %arg5: memref<1x1xf32, #tpu.memory_space<vmem>>, %arg6: memref<1x128xf32, #tpu.memory_space<vmem>>) attributes {dimension_semantics = [#tpu.dimension_semantics<parallel>], iteration_bounds = array<i64: 1>, scalar_prefetch = 0 : i64, scratch_operands = 0 : i64, tpu.core_type = #tpu.core_type<tc>, window_params = [{transform_indices = @transform_0, window_bounds = array<i64: 29, 128>}, {pipeline_mode = #tpu.pipeline_mode<synchronous>, transform_indices = @transform_1, window_bounds = array<i64: 32, 29>}, {pipeline_mode = #tpu.pipeline_mode<synchronous>, transform_indices = @transform_2, window_bounds = array<i64: 32, 1>}, {pipeline_mode = #tpu.pipeline_mode<synchronous>, transform_indices = @transform_3, window_bounds = array<i64: 1, 32>}, {pipeline_mode = #tpu.pipeline_mode<synchronous>, transform_indices = @transform_4, window_bounds = array<i64: 1, 1>}, {transform_indices = @transform_5, window_bounds = array<i64: 1, 128>}]} {
    %c0 = arith.constant 0 : index
    %c0_0 = arith.constant 0 : index
    %0 = vector.load %arg1[%c0, %c0_0] : memref<29x128xf32, #tpu.memory_space<vmem>>, vector<29x128xf32>
    %c0_1 = arith.constant 0 : index
    %c0_2 = arith.constant 0 : index
    %1 = vector.load %arg2[%c0_1, %c0_2] : memref<32x29xf32, #tpu.memory_space<vmem>>, vector<32x29xf32>
    %c0_3 = arith.constant 0 : index
    %c0_4 = arith.constant 0 : index
    %2 = vector.load %arg3[%c0_3, %c0_4] : memref<32x1xf32, #tpu.memory_space<vmem>>, vector<32x1xf32>
    %cst = arith.constant dense<0.000000e+00> : vector<32x128xf32>
    %3 = tpu.matmul %1, %0, %cst {dimension_numbers = #tpu.dot_dimension_numbers<[1], [0], [0], [1], [0, 0, 1, 1], [], []>} : vector<32x29xf32>, vector<29x128xf32>, vector<32x128xf32> -> vector<32x128xf32>
    %4 = vector.broadcast %2 : vector<32x1xf32> to vector<32x128xf32>
    %5 = arith.addf %3, %4 : vector<32x128xf32>
    %cst_5 = arith.constant 0.000000e+00 : f32
    %6 = vector.broadcast %cst_5 : f32 to vector<32x128xf32>
    %7 = arith.maximumf %5, %6 : vector<32x128xf32>
    %c0_6 = arith.constant 0 : index
    %c0_7 = arith.constant 0 : index
    %8 = vector.load %arg4[%c0_6, %c0_7] : memref<1x32xf32, #tpu.memory_space<vmem>>, vector<1x32xf32>
    %c0_8 = arith.constant 0 : index
    %c0_9 = arith.constant 0 : index
    %9 = vector.load %arg5[%c0_8, %c0_9] : memref<1x1xf32, #tpu.memory_space<vmem>>, vector<1x1xf32>
    %cst_10 = arith.constant dense<0.000000e+00> : vector<1x128xf32>
    %10 = tpu.matmul %8, %7, %cst_10 {dimension_numbers = #tpu.dot_dimension_numbers<[1], [0], [0], [1], [0, 0, 1, 1], [], []>} : vector<1x32xf32>, vector<32x128xf32>, vector<1x128xf32> -> vector<1x128xf32>
    %11 = vector.broadcast %9 : vector<1x1xf32> to vector<1x128xf32>
    %12 = arith.addf %10, %11 : vector<1x128xf32>
    %c0_11 = arith.constant 0 : index
    %c0_12 = arith.constant 0 : index
    %13 = vector.load %arg6[%c0_11, %c0_12] : memref<1x128xf32, #tpu.memory_space<vmem>>, vector<1x128xf32>
    tpu.vector_store %arg6[%c0_11, %c0_12], %12 {strides = array<i32>} : memref<1x128xf32, #tpu.memory_space<vmem>>, vector<1x128xf32>,
    return
  }
  func.func @transform_0(%arg0: i32) -> (i32, i32) {
    %c0_i32 = arith.constant 0 : i32
    %c0_i32_0 = arith.constant 0 : i32
    return %c0_i32, %arg0 : i32, i32
  }
  func.func @transform_1(%arg0: i32) -> (i32, i32) {
    %c0_i32 = arith.constant 0 : i32
    %c0_i32_0 = arith.constant 0 : i32
    %c0_i32_1 = arith.constant 0 : i32
    return %c0_i32, %c0_i32_0 : i32, i32
  }
  func.func @transform_2(%arg0: i32) -> (i32, i32) {
    %c0_i32 = arith.constant 0 : i32
    %c0_i32_0 = arith.constant 0 : i32
    %c0_i32_1 = arith.constant 0 : i32
    return %c0_i32, %c0_i32_0 : i32, i32
  }
  func.func @transform_3(%arg0: i32) -> (i32, i32) {
    %c0_i32 = arith.constant 0 : i32
    %c0_i32_0 = arith.constant 0 : i32
    %c0_i32_1 = arith.constant 0 : i32
    return %c0_i32, %c0_i32_0 : i32, i32
  }
  func.func @transform_4(%arg0: i32) -> (i32, i32) {
    %c0_i32 = arith.constant 0 : i32
    %c0_i32_0 = arith.constant 0 : i32
    %c0_i32_1 = arith.constant 0 : i32
    return %c0_i32, %c0_i32_0 : i32, i32
  }
  func.func @transform_5(%arg0: i32) -> (i32, i32) {
    %c0_i32 = arith.constant 0 : i32
    %c0_i32_0 = arith.constant 0 : i32
    return %c0_i32, %arg0 : i32, i32
  }
}

</mosaic_0001>

<bundles_post_ra>
// kernel: tpu_custom_call.1
= control target key start
LH: loop header
LB: loop body
LE: loop exit
PB: predicated region body
PF: predicated region fallthrough
CT: control target
= control target key end

     0   :  { %s450_s0 = inlined_call_operand.vmem [shape: f32[29,128], index: 0, kind: input, shape index: {}]   ;;  %s451_s1 = inlined_call_operand.hbm [shape: f32[32,29], index: 1, kind: input, shape index: {}]   ;;  %s452_s2 = inlined_call_operand.vmem [shape: f32[32,1], index: 2, kind: input, shape index: {}]   ;;  %s453_s3 = inlined_call_operand.vmem [shape: f32[1,32], index: 3, kind: input, shape index: {}]   ;;  %s454_s4 = inlined_call_operand.<no memory space> [shape: f32[1,1], index: 4, kind: input, shape index: {}]   ;;  %s455_s5 = inlined_call_operand.hbm [shape: f32[1,128], index: 5, kind: output, shape index: {}]  }
   0x1   :  { %v10_v0 = vstv %s454_s4 }
   0x2   :  { %11 = vst [vmem:[#allocation2] sm:$0x1] %v10_v0 }
   0x3   :  { %12 = vsyncpa [#allocation4], 0 }
   0x4   :  { %13 = vsyncpa [#allocation5], 0  ;;  %s373_s20 = smov [#allocation3]  }
   0x5   :  { %s21_s21 = sshll.u32 %s373_s20, 4  ;;  %s22_s21 = int_to_ptr.vmem [resolvable:$true] %s21_s21 }
   0x6   :  { %s337_s22 = scalar_lea.vmem %s22_s21, 512  ;;  %p342_p1 = scmp.lt.s32.totalorder %s22_s21, %s22_s21 }
   0x7   :  { %p338_p0 = scmp.ne.s32.totalorder %s22_s21, %s337_s22  ;;  %p343_p2 = scmp.lt.s32.totalorder %s337_s22, %s337_s22 }
   0x9   :  { %p344_p3 = por %p343_p2, %p342_p1 }
   0xb   :  { %p345_p4 = pnand %p344_p3, %p338_p0 }
   0xd   :  { %348 = shalt.err (!%p345_p4)
}
   0xe   :  { %s374_s23 = smov 128   ;;  %s375_s24 = smov 8  }
   0xf   :  { %27 = dma.hbm_to_vmem [thread:$0]  %s451_s1, 512, %s22_s21, [#allocation4], %s374_s23, %s374_s23, %s375_s24  }
  0x10   :  { %369 = dma.done.wait [#allocation4], 512  }
  0x11   :  { %370 = vsyncadd [#allocation4], 4294966784  ;;  %v376_v1 = vmov 0   ;;  %vm82_vm0 = vcmask 1044480   ;;  %vm69_vm1 = vcmask 236544   ;;  %v39_v3 = vld [vmem:[%s450_s0 + $0x10] sm:$0xff]  ;;  %v182_v33 = vlaneseq }
  0x12   :  { %327 = vset.pattern.permute.xlu0 %v376_v1  ;;  %328 = vset.pattern.permute.xlu1 %v376_v1  ;;  %v40_v2 = vld [vmem:[%s450_s0 + $0x18] sm:$0x1f]  ;;  %v41_v4 = vld [vmem:[#allocation3] sm:$0xff]  ;;  %v47_v9 = vld [vmem:[%s452_s2 + $0x10] sm:$0xff]  ;;  %v377_v15 = vmov 0.0   ;;  %vm378_vm2 = vmmov 0  }
  0x13   :  { %295 = vmatprep.subr.msk.mxu0 %vm82_vm0, %v40_v2  ;;  %v38_v5 = vld [vmem:[%s450_s0 + $0x8] sm:$0xff]  ;;  %303 = vmatprep.mubr.msk.f32.mxu0 %vm69_vm1, %v41_v4  ;;  %v48_v6 = vld [vmem:[%s452_s2 + $0x18] sm:$0xff]  ;;  %v37_v8 = vld [vmem:[%s450_s0] sm:$0xff]  ;;  %vm186_vm3 = vcmask 261120   ;;  %v183_v34 = vshrl.u32 %v182_v33, 7  ;;  %s379_s16 = smov [#allocation6]  }
  0x14   :  { %296 = vmatpush3.msk.msra.mxu0 %vm82_vm0, %v40_v2  ;;  %66 = vperm.xlu0 %327, %v48_v6   ;;  %v46_v7 = vld [vmem:[%s452_s2 + $0x8] sm:$0xff]  ;;  %v45_v10 = vld [vmem:[%s452_s2] sm:$0xff]  ;;  %v43_v12 = vld [vmem:[#allocation3 + $0x10] sm:$0xff]  ;;  %s267_s17 = sshll.u32 %s379_s16, 4  ;;  %s268_s17 = int_to_ptr.vmem [resolvable:$true] %s267_s17 }
  0x15   :  { %297 = vmatprep.subr.mxu0 %v39_v3  ;;  %56 = vperm.xlu1 %328, %v46_v7   ;;  %v42_v11 = vld [vmem:[#allocation3 + $0x8] sm:$0xff]  ;;  %v176_v13 = vld [vmem:[#allocation2] sm:$0x1]  ;;  %v184_v35 = vsub.s32 0, %v183_v34  ;;  %s349_s18 = scalar_lea.vmem %s268_s17, 16  ;;  %s353_s19 = scalar_lea.vmem %s268_s17, 32 }
  0x16   :  { %298 = vmatpush3.msra.mxu0 %v39_v3  ;;  %v44_v14 = vld [vmem:[#allocation3 + $0x18] sm:$0xff]  ;;  %309 = vmatprep.subr.mxu1 %v377_v15  ;;  %p350_p5 = scmp.ne.s32.totalorder %s268_s17, %s349_s18  ;;  %p354_p6 = scmp.lt.s32.totalorder %s268_s17, %s268_s17 }
  0x17   :  { %299 = vmatprep.subr.mxu0 %v38_v5  ;;  %317 = vmatprep.mubr.msk.f32.mxu1 %vm378_vm2, %v377_v15  ;;  %v175_v32 = vld [vmem:[%s453_s3] sm:$0x1]  ;;  %p355_p7 = scmp.lt.s32.totalorder %s353_s19, %s349_s18 }
  0x18   :  { %300 = vmatpush3.msra.mxu0 %v38_v5  ;;  %61 = vperm.xlu0 %327, %v47_v9  }
  0x19   :  { %301 = vmatprep.subr.mxu0 %v37_v8  ;;  %51 = vperm.xlu1 %328, %v45_v10   ;;  %p356_p8 = por %p355_p7, %p354_p6 }
  0x1a   :  { %302 = vmatpush3.msra.mxu0 %v37_v8 }
  0x1b   :  { %304 = vmatmul.mubr.msk.f32.vlgmr.msra.gmra.mxu0 %vm69_vm1, %v42_v11  ;;  %p357_p9 = pnand %p356_p8, %p350_p5 }
  0x1c   :  { %306 = vmatprep.mubr.msk.f32.mxu0 %vm69_vm1, %v43_v12  ;;  %179 = vperm.xlu0 %327, %v176_v13  }
  0x1f   :  { %307 = vmatmul.mubr.msk.f32.gmra.mxu0 %vm69_vm1, %v44_v14 }
  0x8f   :  { %v67_v16 = vpop.permute.xlu0 %66 }
  0x90   :  { %v57_v17 = vpop.permute.xlu1 %56 }
  0x93   :  { %v62_v21 = vpop.permute.xlu0 %61 }
  0x94   :  { %v52_v23 = vpop.permute.xlu1 %51 }
  0x97   :  { %v180_v36 = vpop.permute.xlu0 %179 }
  0x98   :  { %v185_v37 = vrot.slane %v180_v36, %v184_v35 }
  0xdb   :  { %v305_v18 = vpop.f32.mrf.mxu0 }
  0xdc   :  { %v158_v25 = vadd.f32 %v305_v18, %v57_v17 }
  0xdd   :  { %v152_v19 = vpop.f32.mrf.mxu0 }
  0xde   :  { %v153_v28 = vadd.f32 %v152_v19, %v52_v23  ;;  %v172_v30 = vmax.f32 %v158_v25, 0.0 }
  0xdf   :  { %v308_v20 = vpop.f32.mrf.mxu0 }
  0xe0   :  { %v168_v22 = vadd.f32 %v308_v20, %v67_v16  ;;  %v171_v31 = vmax.f32 %v153_v28, 0.0 }
  0xe1   :  { %v162_v24 = vpop.f32.mrf.mxu0 }
  0xe2   :  { %v174_v26 = vmax.f32 %v168_v22, 0.0  ;;  %v163_v27 = vadd.f32 %v162_v24, %v62_v21 }
  0xe4   :  { %v173_v29 = vmax.f32 %v163_v27, 0.0  ;;  %310 = vmatpush3.msra.mxu1 %v174_v26 }
  0xe5   :  { %311 = vmatprep.subr.mxu1 %v377_v15 }
  0xe6   :  { %312 = vmatpush3.msra.mxu1 %v173_v29 }
  0xe7   :  { %313 = vmatprep.subr.mxu1 %v377_v15 }
  0xe8   :  { %314 = vmatpush3.msra.mxu1 %v172_v30 }
  0xe9   :  { %315 = vmatprep.subr.mxu1 %v377_v15 }
  0xea   :  { %316 = vmatpush3.msra.mxu1 %v171_v31 }
  0xeb   :  { %318 = vmatmul.mubr.msk.f32.vlgmr.msra.gmra.mxu1 %vm186_vm3, %v175_v32 }
 0x1ab   :  { %v256_v38 = vpop.f32.mrf.mxu1 }
 0x1ac   :  { %v257_v39 = vadd.f32 %v256_v38, %v185_v37 }
 0x1ad   :  { %v319_v40 = vpop.f32.mrf.mxu1 }
 0x1ae   :  { %260 = vst [vmem:[#allocation6] sm:$0x1] %v257_v39 }
 0x1af   :  { %360 = shalt.err (!%p357_p9)
}
 0x1b0   :  { %270 = dma.vmem_to_hbm [thread:$0]  %s268_s17, 16, %s455_s5, [#allocation5]  }
 0x1b1   :  { %371 = dma.done.wait [#allocation5], 16  }
 0x1b2   :  { %372 = vsyncadd [#allocation5], 4294967280 }
 0x1b3   :  { %274 = vsyncpa [#allocation4], 1 }
 0x1b4   :  { %275 = vsyncpa [#allocation5], 1 }

</bundles_post_ra>
